<compile_context>
chip_gen: v7x
topology: tpu7x:2x2x1
jax: 0.10.0
libtpu: 0.0.40
codegen_flags: <defaults>
</compile_context>

<pallas_src>
import functools

import jax
import jax.numpy as jnp
from jax import lax
from jax.experimental import pallas as pl
from jax.experimental.pallas import tpu as pltpu

BN_EPS = 1e-5


def _pick_tk(K, cap=19200):
    """Largest multiple of 128 that divides K and is <= cap."""
    assert K % 128 == 0, "per-split gross_features must be a multiple of 128"
    best = None
    t = 128
    while t <= min(K, cap):
        if K % t == 0:
            best = t
        t += 128
    assert best is not None
    return best


# ----------------------------------------------------------------------------
# Kernel 1: partial feat_reducer matmul.
#   partials[c] = feats @ W_fr[:, c-th K slice]^T        (n_split, B, F)
# Weight is stored transposed as (F, gross_features); each grid step streams a
# lane-dense (F, tk) weight slab (bf16 by default) and a (B, tk) activation
# slab and contracts their last dims into a resident (B, F) f32 accumulator.
# The leading grid axis is "parallel" so the two K halves can run on the two
# v7x TensorCores (harmless single-core loop on v5e/v6e).  Bias/BN/ReLU happen
# after the cross-split combine, outside this kernel.
# ----------------------------------------------------------------------------
def _feat_reducer_partial_kernel(x_ref, wt_ref, o_ref, acc_ref):
    k = pl.program_id(1)

    @pl.when(k == 0)
    def _():
        acc_ref[...] = jnp.zeros_like(acc_ref)

    w = wt_ref[...]                       # (F, tk), f32 or bf16
    x = x_ref[...].astype(w.dtype)        # cheap VPU cast when streaming bf16
    # (B, tk) . (F, tk) contracted on the last dim -> (B, F), f32 accumulate.
    acc_ref[...] += lax.dot_general(
        x, w,
        dimension_numbers=(((1,), (1,)), ((), ())),
        preferred_element_type=jnp.float32,
    )

    @pl.when(k == pl.num_programs(1) - 1)
    def _():
        o_ref[0] = acc_ref[...]


def feat_reducer_partial(feats, w_t, *, n_split=2, tk=None, tk_cap=19200):
    B, K = feats.shape
    F = w_t.shape[0]
    assert w_t.shape == (F, K)
    if K % (n_split * 128) != 0:          # graceful fallback for odd shapes
        n_split = 1
    K_c = K // n_split
    if tk is None:
        tk = _pick_tk(K_c, tk_cap)
    assert K_c % tk == 0 and tk % 128 == 0
    kb = K_c // tk                        # K tiles per split

    bytes_accessed = int(
        feats.size * feats.dtype.itemsize
        + w_t.size * w_t.dtype.itemsize
        + n_split * B * F * 4
    )
    return pl.pallas_call(
        _feat_reducer_partial_kernel,
        out_shape=jax.ShapeDtypeStruct((n_split, B, F), jnp.float32),
        grid_spec=pltpu.PrefetchScalarGridSpec(
            num_scalar_prefetch=0,
            grid=(n_split, kb),
            in_specs=[
                pl.BlockSpec((B, tk), lambda c, k: (0, c * kb + k)),  # activations
                pl.BlockSpec((F, tk), lambda c, k: (0, c * kb + k)),  # lane-dense weights
            ],
            out_specs=pl.BlockSpec((1, B, F), lambda c, k: (c, 0, 0)),
            scratch_shapes=[pltpu.VMEM((B, F), jnp.float32)],
        ),
        compiler_params=pltpu.CompilerParams(
            dimension_semantics=("parallel", "arbitrary"),
            vmem_limit_bytes=32 * 1024 * 1024,
        ),
        cost_estimate=pl.CostEstimate(
            flops=2 * B * K * F, transcendentals=0, bytes_accessed=bytes_accessed
        ),
    )(feats, w_t)


# ----------------------------------------------------------------------------
# Kernel 2: MLP head with the repeat/concat fused away.
# Grid over batches ("parallel"); each step handles the P particles of one
# batch.  red_h[b] = reduced[b] @ W0_red + b0 is precomputed (hoisted), so:
#   h   = ReLU(msg_b @ W0_msg + red_h[b])               (P, H)
#   h   = ReLU(h @ W1 + b1)                             (P, H)   (n_hidden = 1)
#   out = Sigmoid(w2_row . h^T + b2) + minn             (1, P)   lane-dense row
# ----------------------------------------------------------------------------
def _mlp_kernel(msg_ref, redh_ref, w0m_ref, w1_ref, b1_ref, w2t_ref, b2_ref,
                o_ref, *, minn):
    msg = msg_ref[0]                                                    # (P, 3)
    h = jnp.dot(msg, w0m_ref[...], preferred_element_type=jnp.float32)  # (P, H)
    h = jnp.maximum(h + redh_ref[...], 0.0)            # redh broadcasts over P
    h = jnp.maximum(
        jnp.dot(h, w1_ref[...], preferred_element_type=jnp.float32) + b1_ref[...],
        0.0,
    )
    # (1, H) . (P, H) contracted on the last dims -> (1, P): result is already
    # lane-major so the store is a single lane-dense row, no width-1 vst.msk.
    z = lax.dot_general(
        w2t_ref[...], h,
        dimension_numbers=(((1,), (1,)), ((), ())),
        preferred_element_type=jnp.float32,
    )
    o_ref[...] = jax.nn.sigmoid(z + b2_ref[...]) + minn


def mlp_head(msg_bp3, red_h, w0_msg, w1, b1, w2_row, b2, *, minn):
    B, P, M = msg_bp3.shape               # M == 3
    H = w0_msg.shape[1]
    assert red_h.shape == (B, H) and w2_row.shape == (1, H)

    full = lambda shape: pl.BlockSpec(shape, lambda b: (0, 0))
    return pl.pallas_call(
        functools.partial(_mlp_kernel, minn=minn),
        out_shape=jax.ShapeDtypeStruct((B, P), jnp.float32),
        grid_spec=pltpu.PrefetchScalarGridSpec(
            num_scalar_prefetch=0,
            grid=(B,),
            in_specs=[
                pl.BlockSpec((1, P, M), lambda b: (b, 0, 0)),  # this batch's particles
                pl.BlockSpec((1, H), lambda b: (b, 0)),        # hoisted red_h row
                full((M, H)),
                full((H, H)), full((1, H)),
                full((1, H)), full((1, 1)),
            ],
            out_specs=pl.BlockSpec((1, P), lambda b: (b, 0)),  # lane-dense row
        ),
        compiler_params=pltpu.CompilerParams(dimension_semantics=("parallel",)),
    )(msg_bp3, red_h, w0_msg, w1, b1, w2_row, b2)


# ----------------------------------------------------------------------------
# Full forward.
# ----------------------------------------------------------------------------
def unary_density(msg_particles, feats, params, minn=0.0005, *,
                  fr_tk=None, n_split=2, use_bf16_weights=True):
    B, K = feats.shape
    N = msg_particles.shape[0]
    assert N % B == 0
    P = N // B

    w_fr_t = params["w_fr_t"]
    if use_bf16_weights:
        # Halves the weight stream of the bandwidth-bound kernel (~97% of its
        # HBM traffic); f32 accumulation in-kernel.  feats stay f32 in HBM.
        w_fr_t = w_fr_t.astype(jnp.bfloat16)

    partials = feat_reducer_partial(feats, w_fr_t, n_split=n_split, tk=fr_tk)

    # Tiny jnp glue (B x F = 2 x 64): cross-split combine + bias + training-mode
    # BN + ReLU, then the hoisted first-layer reduced-feature contribution.
    y = jnp.sum(partials, axis=0) + params["b_fr"]
    mean = jnp.mean(y, axis=0, keepdims=True)
    var = jnp.mean((y - mean) ** 2, axis=0, keepdims=True)   # biased var (torch train BN)
    reduced = jnp.maximum(
        params["gamma"] * (y - mean) * lax.rsqrt(var + BN_EPS) + params["beta"], 0.0
    )
    red_h = reduced @ params["w0_red"] + params["b0"]        # (B, H), b0 folded in

    out_bp = mlp_head(
        msg_particles.reshape(B, P, msg_particles.shape[1]),
        red_h,
        params["w0_msg"], params["w1"], params["b1"],
        params["w2"].T, params["b2"],
        minn=minn,
    )
    return out_bp.reshape(N, 1)


# ----------------------------------------------------------------------------
# Pure-JAX reference for correctness checking.  matmul_dtype=bfloat16 simulates
# the bf16 weight-streaming path (products in bf16, f32 accumulation).
# ----------------------------------------------------------------------------
def unary_density_ref(msg_particles, feats, params, minn=0.0005, *,
                      matmul_dtype=jnp.float32):
    y = lax.dot_general(
        feats.astype(matmul_dtype), params["w_fr_t"].astype(matmul_dtype),
        dimension_numbers=(((1,), (1,)), ((), ())),
        preferred_element_type=jnp.float32,
    ) + params["b_fr"]
    mean = jnp.mean(y, axis=0, keepdims=True)
    var = jnp.mean((y - mean) ** 2, axis=0, keepdims=True)
    y = (y - mean) / jnp.sqrt(var + BN_EPS)
    y = jnp.maximum(params["gamma"] * y + params["beta"], 0.0)
    n_rep = msg_particles.shape[0] // feats.shape[0]
    # torch: out.unsqueeze(1).repeat((1, P, 1)).view(N, -1) == repeat along axis 0
    x = jnp.concatenate([msg_particles, jnp.repeat(y, n_rep, axis=0)], axis=1)
    w0 = jnp.concatenate([params["w0_msg"], params["w0_red"]], axis=0)
    h = jnp.maximum(x @ w0 + params["b0"], 0.0)
    h = jnp.maximum(h @ params["w1"] + params["b1"], 0.0)
    return jax.nn.sigmoid(h @ params["w2"] + params["b2"]) + minn


if __name__ == "__main__":
    # Small shapes consistent with the module's forward:
    #   feats: (B, gross_features), msg_particles: (B*P, 3)
    B, P = 2, 8
    GROSS, IN_F, N_F = 2048, 64, 64          # gross_features scaled down from 153600

    key = jax.random.PRNGKey(0)
    ks = jax.random.split(key, 11)

    msg_particles = jax.random.normal(ks[0], (B * P, 3), dtype=jnp.float32)
    feats = jax.random.normal(ks[1], (B, GROSS), dtype=jnp.float32)

    params = {
        # feat_reducer: Linear(gross -> in), weight stored transposed (in, gross)
        # for lane-dense streaming; BN gamma=1, beta=0 (default init).
        "w_fr_t": jax.random.normal(ks[2], (IN_F, GROSS), jnp.float32) / jnp.sqrt(GROSS),
        "b_fr": 0.1 * jax.random.normal(ks[3], (1, IN_F), jnp.float32),
        "gamma": jnp.ones((1, IN_F), jnp.float32),
        "beta": jnp.zeros((1, IN_F), jnp.float32),
        # first MLP layer split into msg (3 -> n) and reduced-feature (in -> n) parts
        "w0_msg": jax.random.normal(ks[4], (3, N_F), jnp.float32) / jnp.sqrt(3 + IN_F),
        "w0_red": jax.random.normal(ks[5], (IN_F, N_F), jnp.float32) / jnp.sqrt(3 + IN_F),
        "b0": 0.1 * jax.random.normal(ks[6], (1, N_F), jnp.float32),
        "w1": jax.random.normal(ks[7], (N_F, N_F), jnp.float32) / jnp.sqrt(N_F),
        "b1": 0.1 * jax.random.normal(ks[8], (1, N_F), jnp.float32),
        "w2": jax.random.normal(ks[9], (N_F, 1), jnp.float32) / jnp.sqrt(N_F),
        "b2": 0.1 * jax.random.normal(ks[10], (1, 1), jnp.float32),
    }

    # fr_tk=512 at this small GROSS exercises multi-step K accumulation and the
    # 2-way split; in production (GROSS=153600) leave fr_tk=None -> tk=19200.
    # Exact-f32 path vs f32 reference.
    out_f32 = jax.block_until_ready(
        unary_density(msg_particles, feats, params, fr_tk=512, use_bf16_weights=False))
    ref_f32 = jax.block_until_ready(unary_density_ref(msg_particles, feats, params))
    assert out_f32.shape == (B * P, 1)
    assert jnp.allclose(out_f32, ref_f32, atol=2e-4, rtol=2e-4), \
        float(jnp.max(jnp.abs(out_f32 - ref_f32)))

    # Default bf16 weight-streaming path vs bf16-simulating reference.
    out_bf16 = jax.block_until_ready(unary_density(msg_particles, feats, params, fr_tk=512))
    ref_bf16 = jax.block_until_ready(
        unary_density_ref(msg_particles, feats, params, matmul_dtype=jnp.bfloat16))
    assert out_bf16.shape == (B * P, 1)
    assert jnp.allclose(out_bf16, ref_bf16, atol=5e-3, rtol=5e-3), \
        float(jnp.max(jnp.abs(out_bf16 - ref_bf16)))

    print("KERNEL_OK")
</pallas_src>

<mosaic_0001>
module attributes {stable_mosaic.version = 11 : i64} {
  func.func @_feat_reducer_partial_kernel(%arg0: i32, %arg1: i32, %arg2: memref<2x512xf32, #tpu.memory_space<vmem>>, %arg3: memref<64x512xf32, #tpu.memory_space<vmem>>, %arg4: memref<1x2x64xf32, #tpu.memory_space<vmem>>, %arg5: memref<2x64xf32, #tpu.memory_space<vmem>>) attributes {dimension_semantics = [#tpu.dimension_semantics<parallel>, #tpu.dimension_semantics<arbitrary>], iteration_bounds = array<i64: 2, 2>, scalar_prefetch = 0 : i64, scratch_operands = 1 : i64, tpu.core_type = #tpu.core_type<tc>, window_params = [{transform_indices = @transform_0, window_bounds = array<i64: 2, 512>}, {transform_indices = @transform_1, window_bounds = array<i64: 64, 512>}, {transform_indices = @transform_2, window_bounds = array<i64: 1, 2, 64>}]} {
    %c0_i32 = arith.constant 0 : i32
    %0 = arith.cmpi eq, %arg1, %c0_i32 : i32
    %1 = arith.extui %0 : i1 to i32
    %c0_i32_0 = arith.constant 0 : i32
    %2 = arith.cmpi ne, %1, %c0_i32_0 : i32
    scf.if %2 {
      %cst_9 = arith.constant 0.000000e+00 : f32
      %12 = vector.broadcast %cst_9 : f32 to vector<2x64xf32>
      %c0_10 = arith.constant 0 : index
      %c0_11 = arith.constant 0 : index
      %13 = vector.load %arg5[%c0_10, %c0_11] : memref<2x64xf32, #tpu.memory_space<vmem>>, vector<2x64xf32>
      tpu.vector_store %arg5[%c0_10, %c0_11], %12 {strides = array<i32>} : memref<2x64xf32, #tpu.memory_space<vmem>>, vector<2x64xf32>,
    } else {
    }
    %c0 = arith.constant 0 : index
    %c0_1 = arith.constant 0 : index
    %3 = vector.load %arg3[%c0, %c0_1] : memref<64x512xf32, #tpu.memory_space<vmem>>, vector<64x512xf32>
    %c0_2 = arith.constant 0 : index
    %c0_3 = arith.constant 0 : index
    %4 = vector.load %arg2[%c0_2, %c0_3] : memref<2x512xf32, #tpu.memory_space<vmem>>, vector<2x512xf32>
    %c0_4 = arith.constant 0 : index
    %c0_5 = arith.constant 0 : index
    %5 = vector.load %arg5[%c0_4, %c0_5] : memref<2x64xf32, #tpu.memory_space<vmem>>, vector<2x64xf32>
    %cst = arith.constant dense<0.000000e+00> : vector<2x64xf32>
    %6 = tpu.matmul %4, %3, %cst {dimension_numbers = #tpu.dot_dimension_numbers<[1], [1], [0], [0], [0, 0, 1, 0], [], []>} : vector<2x512xf32>, vector<64x512xf32>, vector<2x64xf32> -> vector<2x64xf32>
    %7 = arith.addf %5, %6 : vector<2x64xf32>
    %c0_6 = arith.constant 0 : index
    %c0_7 = arith.constant 0 : index
    %8 = vector.load %arg5[%c0_6, %c0_7] : memref<2x64xf32, #tpu.memory_space<vmem>>, vector<2x64xf32>
    tpu.vector_store %arg5[%c0_6, %c0_7], %7 {strides = array<i32>} : memref<2x64xf32, #tpu.memory_space<vmem>>, vector<2x64xf32>,
    %c1_i32 = arith.constant 1 : i32
    %9 = arith.cmpi eq, %arg1, %c1_i32 : i32
    %10 = arith.extui %9 : i1 to i32
    %c0_i32_8 = arith.constant 0 : i32
    %11 = arith.cmpi ne, %10, %c0_i32_8 : i32
    scf.if %11 {
      %c0_9 = arith.constant 0 : index
      %c0_10 = arith.constant 0 : index
      %12 = vector.load %arg5[%c0_9, %c0_10] : memref<2x64xf32, #tpu.memory_space<vmem>>, vector<2x64xf32>
      %c0_11 = arith.constant 0 : index
      %c0_12 = arith.constant 0 : index
      %c0_13 = arith.constant 0 : index
      %13 = vector.load %arg4[%c0_11, %c0_12, %c0_13] : memref<1x2x64xf32, #tpu.memory_space<vmem>>, vector<1x2x64xf32>
      %14 = vector.shape_cast %13 : vector<1x2x64xf32> to vector<2x64xf32>
      %15 = vector.shape_cast %12 : vector<2x64xf32> to vector<1x2x64xf32>
      tpu.vector_store %arg4[%c0_11, %c0_12, %c0_13], %15 {strides = array<i32>} : memref<1x2x64xf32, #tpu.memory_space<vmem>>, vector<1x2x64xf32>,
    } else {
    }
    return
  }
  func.func @transform_0(%arg0: i32, %arg1: i32) -> (i32, i32) {
    %c2_i32 = arith.constant 2 : i32
    %0 = arith.muli %arg0, %c2_i32 : i32
    %1 = arith.addi %0, %arg1 : i32
    %c0_i32 = arith.constant 0 : i32
    %c0_i32_0 = arith.constant 0 : i32
    return %c0_i32, %1 : i32, i32
  }
  func.func @transform_1(%arg0: i32, %arg1: i32) -> (i32, i32) {
    %c2_i32 = arith.constant 2 : i32
    %0 = arith.muli %arg0, %c2_i32 : i32
    %1 = arith.addi %0, %arg1 : i32
    %c0_i32 = arith.constant 0 : i32
    %c0_i32_0 = arith.constant 0 : i32
    return %c0_i32, %1 : i32, i32
  }
  func.func @transform_2(%arg0: i32, %arg1: i32) -> (i32, i32, i32) {
    %c0_i32 = arith.constant 0 : i32
    %c0_i32_0 = arith.constant 0 : i32
    %c0_i32_1 = arith.constant 0 : i32
    return %arg0, %c0_i32, %c0_i32_0 : i32, i32, i32
  }
}

</mosaic_0001>

<bundles_post_ra>
// kernel: tpu_custom_call.1
= control target key start
LH: loop header
LB: loop body
LE: loop exit
PB: predicated region body
PF: predicated region fallthrough
CT: control target
= control target key end

     0   :  { %s1262_s0 = inlined_call_operand.hbm [shape: f32[2,2048], index: 0, kind: input, shape index: {}]   ;;  %s1263_s1 = inlined_call_operand.hbm [shape: f32[64,2048], index: 1, kind: input, shape index: {}]   ;;  %s1264_s2 = inlined_call_operand.hbm [shape: f32[2,2,64], index: 2, kind: output, shape index: {}]  }
   0x1   :  { %1269 = sst [smem:[#allocation14_spill]] %s1262_s0 }
   0x2   :  { %7 = vsyncpa [#allocation4], 0 }
   0x3   :  { %9 = vsyncpa [#allocation4 + $0x1], 0 }
   0x4   :  { %10 = vsyncpa [#allocation7], 0 }
   0x5   :  { %12 = vsyncpa [#allocation7 + $0x1], 0 }
   0x6   :  { %13 = vsyncpa [#allocation5], 0 }
   0x7   :  { %15 = vsyncpa [#allocation5 + $0x1], 0  ;;  %s947_s9 = smov 0   ;;  %s949_s10 = smov 0  }
   0x8   :  { %s951_s11 = smov 0   ;;  %s953_s12 = smov 0  }
   0x9   :  { %s955_s13 = smov 0   ;;  %s957_s14 = smov 0  }
   0xa   :  { %s959_s15 = smov 0   ;;  %s961_s16 = smov 0  }
   0xb   :  { %s963_s17 = smov 0   ;;  %s965_s18 = smov 0  }
   0xc   :  { %s967_s19 = smov 0  }
   0xd LB: > { %s563_s20 = sadd.s32 4294967295, %s922_s19   ;;  %s564_s21 = sadd.s32 4294967294, %s922_s19   ;;  %s922_s19 = sphi %s967_s19, %s21_s19   ;;  %s918_s18 = sphi %s965_s18, %s1294_s18   ;;  %s914_s17 = sphi %s963_s17, %s1293_s17   ;;  %s910_s16 = sphi %s961_s16, %s1292_s16   ;;  %s906_s15 = sphi %s959_s15, %s1291_s15   ;;  %s902_s14 = sphi %s957_s14, %s1290_s14   ;;  %s898_s13 = sphi %s955_s13, %s1289_s13   ;;  %s894_s12 = sphi %s953_s12, %s1288_s12   ;;  %s890_s11 = sphi %s951_s11, %s1287_s11   ;;  %s886_s10 = sphi %s949_s10, %s1286_s10   ;;  %s882_s9 = sphi %s947_s9, %s1285_s9  }
   0xe   : > { %s30_s22 = sadd.s32 1, %s914_s17  ;;  %s33_s23 = sadd.s32 1, %s918_s18 }
   0xf   : > { %p31_p0 = scmp.ge.s32.totalorder %s30_s22, 2  ;;  %s565_s24 = sshll.u32 %s918_s18, 1 }
  0x10   : > { %s1006_s25 = sadd.s32 %s914_s17, %s565_s24  ;;  %s44_s26 = sadd.s32 1, %s902_s14 }
  0x11   : > { %s1296_s22 = smov (%p31_p0, %s30_s22), 0  ;;  %s1298_s23 = smov (!%p31_p0, %s33_s23), %s918_s18 }
  0x12   : > { %1270 = sst [smem:[#allocation12_spill]] %s1296_s22  ;;  %p51_p1 = scmp.ne.s32.totalorder %s902_s14, %s898_s13 }
  0x13   : > { %p52_p2 = scmp.eq.s32.totalorder %s922_s19, 0  ;;  %p35_p3 = scmp.ge.s32.totalorder %s1298_s23, 2 }
  0x14   : > { %p57_p4 = scmp.ne.s32.totalorder %s898_s13, %s894_s12  ;;  %p58_p6 = scmp.eq.s32.totalorder %s563_s20, 0 }
  0x15   : > { %p1016_p5 = por %p52_p2, %p51_p1  ;;  %s1300_s23 = smov (%p35_p3, %s1298_s23), 0 }
  0x16   : > { %1272 = sst [smem:[#allocation13_spill]] %s1300_s23  ;;  %p1022_p7 = por %p58_p6, %p57_p4 }
  0x17   : > { %s100_s29 = sadd.s32 1, %s890_s11  ;;  %s566_s30 = sshll.u32 %s1300_s23, 1 }
  0x18   : > { %s1273_s28 = scalar_select %p1022_p7, 1, 0 }
  0x19   : > { %s97_s3 = ssub.s32 %s918_s18, %s1300_s23  ;;  %s40_s4 = sadd.s32 %s566_s30, %s1296_s22 }
  0x1a   : > { %p98_p8 = scmp.eq.s32.totalorder %s97_s3, 0  ;;  %s41_s5 = ssub.s32 %s1006_s25, %s40_s4 }
  0x1b   : > { %p110_p9 = scmp.ne.s32.totalorder %s890_s11, %s886_s10  ;;  %p42_p10 = scmp.eq.s32.totalorder %s41_s5, 0 }
  0x1c   : > { %p111_p11 = scmp.eq.s32.totalorder %s563_s20, 3  ;;  %p116_p13 = scmp.ne.s32.totalorder %s886_s10, %s882_s9 }
  0x1d   : > { %s1035_s6 = scalar_select %p98_p8, %s890_s11, %s100_s29  }
  0x1e   : > { %s1038_s7 = scalar_select %p42_p10, %s902_s14, %s44_s26  }
  0x1f   : > { %p1040_p12 = por %p111_p11, %p110_p9  ;;  %p117_p0 = scmp.eq.s32.totalorder %s564_s21, 3 }
  0x20   : > { %p640_p1 = scmp.lt.s32.totalorder %s922_s19, 4  ;;  %s1050_s12 = sand.u32 1, %s902_s14  }
  0x21   : > { %s1274_s8 = scalar_select %p1040_p12, 1, 0 }
  0x22   : > { %p1052_p2 = por %p117_p0, %p116_p13  ;;  %s571_s20 = sshll.u32 %s1050_s12, 3 }
  0x23   : > { %s589_s26 = sshll.u32 %s1006_s25, 7  ;;  %s1276_s0 = sld [smem:[#allocation14_spill]] }
  0x24   : > { %s1275_s24 = scalar_select %p1052_p2, 1, 0 }
  0x25   : > { %s141_s21 = scalar_lea.vmem [#allocation3], %s571_s20  ;;  %p1065_p3 = pnand %p640_p1, %p1016_p5 }
  0x26   : > { %s151_s4 = sshll.u32 %s141_s21, 4  ;;  %s138_s22 = scalar_lea.sflag [#allocation4], %s1050_s12  ;;  %s1069_s4 = int_to_ptr.vmem [resolvable:$true] %s151_s4 }
  0x27   : > { %p738_p6 = pneg %p1065_p3 }
  0x29   : > { %s1061_s3 = scalar_lea.hbm %s1276_s0, %s589_s26  ;;  %s741_s26 = scalar_lea.hbm %s1276_s0, 512 }
  0x2a   : > { %s736_s29 = scalar_lea.hbm %s1061_s3, 128  ;;  %p742_p5 = scmp.lt.u32.totalorder %s1061_s3, %s1276_s0 }
  0x2b   : > { %p737_p4 = scmp.ne.s32.totalorder %s1061_s3, %s736_s29  ;;  %p743_p10 = scmp.lt.u32.totalorder %s741_s26, %s736_s29 }
  0x2c   : > { %p745_p13 = scmp.lt.u32.totalorder %s736_s29, %s1061_s3 }
  0x2d   : > { %p739_p8 = pnand %p738_p6, %p737_p4  ;;  %p744_p11 = por %p743_p10, %p742_p5 }
  0x2f   : > { %p740_p9 = pneg %p739_p8  ;;  %p746_p0 = por %p745_p13, %p744_p11 }
  0x31   : > { %p747_p1 = pnand %p746_p0, %p740_p9 }
  0x33   : > { %750 = shalt.err (!%p747_p1)
}
  0x34   : > { %s751_s23 = scalar_lea.vmem %s1069_s4, 128  ;;  %s924_s20 = smov [#allocation3]  }
  0x35   : > { %p752_p4 = scmp.ne.s32.totalorder %s1069_s4, %s751_s23  ;;  %s756_s27 = sshll.u32 %s924_s20, 4  ;;  %s757_s27 = int_to_ptr.vmem [resolvable:$false] %s756_s27 }
  0x36   : > { %s758_s30 = scalar_lea.vmem %s757_s27, 256  ;;  %p759_p12 = scmp.lt.s32.totalorder %s1069_s4, %s757_s27 }
  0x37   : > { %p754_p8 = pnand %p752_p4, %p738_p6  ;;  %p760_p5 = scmp.lt.s32.totalorder %s758_s30, %s751_s23 }
  0x39   : > { %p755_p2 = pneg %p754_p8  ;;  %p761_p10 = por %p760_p5, %p759_p12 }
  0x3b   : > { %p762_p11 = pnand %p761_p10, %p755_p2 }
  0x3d   : > { %765 = shalt.err (!%p762_p11)
}
  0x3e   : > { %632 = dma.hbm_to_vmem [thread:$0]  (!%p1065_p3), %s1061_s3, 128, %s1069_s4, %s138_s22  }
  0x3f   : > { %s590_s29 = sshll.u32 %s1006_s25, 9  ;;  %p579_p12 = scmp.ge.s32.totalorder %s922_s19, 1 }
  0x40   : > { %s1102_s20 = scalar_lea.hbm %s1263_s1, %s590_s29  ;;  %p179_p2 = scmp.lt.s32.totalorder %s922_s19, 5 }
  0x41   : > { %s1278_s23 = sshll.u32 %s1050_s12, 8  ;;  %s159_s22 = scalar_lea.sflag [#allocation7], %s1050_s12 }
  0x42   : > { %s162_s27 = scalar_lea.vmem [#allocation6], %s1278_s23  ;;  %p1110_p9 = pnand %p579_p12, %p179_p2 }
  0x43   : > { %s171_s30 = sshll.u32 %s162_s27, 4  ;;  %s766_s25 = scalar_lea.hbm %s1102_s20, 4096  ;;  %s1108_s30 = int_to_ptr.vmem [resolvable:$true] %s171_s30 }
  0x44   : > { %p767_p13 = scmp.ne.s32.totalorder %s1102_s20, %s766_s25  ;;  %s771_s29 = scalar_lea.hbm %s1263_s1, 16384 }
  0x45   : > { %p772_p4 = scmp.lt.u32.totalorder %s1102_s20, %s1263_s1  ;;  %p773_p8 = scmp.lt.u32.totalorder %s771_s29, %s766_s25 }
  0x46   : > { %p769_p0 = pnand %p767_p13, %p738_p6  ;;  %p775_p10 = scmp.lt.u32.totalorder %s766_s25, %s1102_s20 }
  0x47   : > { %p774_p5 = por %p773_p8, %p772_p4 }
  0x48   : > { %p770_p1 = pneg %p769_p0 }
  0x49   : > { %p776_p11 = por %p775_p10, %p774_p5 }
  0x4b   : > { %p777_p12 = pnand %p776_p11, %p770_p1 }
  0x4d   : > { %780 = shalt.err (!%p777_p12)
}
  0x4e   : > { %s781_s23 = scalar_lea.vmem %s1108_s30, 4096  ;;  %s925_s27 = smov [#allocation6]  }
  0x4f   : > { %p782_p2 = scmp.ne.s32.totalorder %s1108_s30, %s781_s23  ;;  %s786_s3 = sshll.u32 %s925_s27, 4  ;;  %s787_s3 = int_to_ptr.vmem [resolvable:$false] %s786_s3 }
  0x50   : > { %s788_s4 = scalar_lea.vmem %s787_s3, 8192  ;;  %p789_p7 = scmp.lt.s32.totalorder %s1108_s30, %s787_s3 }
  0x51   : > { %p784_p13 = pnand %p782_p2, %p738_p6  ;;  %p790_p4 = scmp.lt.s32.totalorder %s788_s4, %s781_s23 }
  0x53   : > { %p785_p0 = pneg %p784_p13  ;;  %p791_p8 = por %p790_p4, %p789_p7 }
  0x55   : > { %p792_p5 = pnand %p791_p8, %p785_p0 }
  0x57   : > { %795 = shalt.err (!%p792_p5)
}
  0x58   : > { %s926_s25 = smov 2048   ;;  %s927_s29 = smov 512  }
  0x59   : > { %s928_s26 = smov 32   ;;  %183 = sbr.rel (%p1110_p9) target bundleno = 396 (0x18c), region = 28 }
  0x5a   : > { %635 = dma.hbm_to_vmem [thread:$0]  (!%p1065_p3), %s1102_s20, 4096, %s1108_s30, %s159_s22, %s926_s25, %s927_s29, %s928_s26  }
  0x5b   : > { %s185_s21 = sand.u32 (!%p1110_p9), 1, %s898_s13   ;;  %p1280_p7 = scmp.ne.s32.totalorder (!%p1110_p9), %s1273_s28, 0 }
  0x5c   : > { %s580_s23 = sshll.u32 (!%p1110_p9), %s185_s21, 3  ;;  %s186_s27 = scalar_lea.sflag (!%p1110_p9), [#allocation4], %s185_s21 }
  0x5d   : > { %s1143_s3 = scalar_lea.vmem (!%p1110_p9), [#allocation3], %s580_s23 }
  0x60   : > { %869 = dma.done.wait (%p1280_p7), %s186_s27, 128  }
  0x61   : > { %871 = vsyncadd (%p1280_p7), %s186_s27, 4294967168  ;;  %s581_s4 = sshll.u32 %s185_s21, 8  ;;  %s195_s5 = scalar_lea.sflag [#allocation7], %s185_s21 }
  0x62   : > { %s1149_s12 = scalar_lea.vmem [#allocation6], %s581_s4 }
  0x63   : > { %873 = dma.done.wait (%p1280_p7), %s195_s5, 4096  }
  0x64   : > { %875 = vsyncadd (%p1280_p7), %s195_s5, 4294963200  ;;  %s221_s0 = sand.u32 1, %s886_s10   ;;  %p583_p3 = scmp.ne.s32.totalorder %s906_s15, 0 }
  0x65   : > { %s1158_s20 = sshll.u32 %s221_s0, 1  ;;  %vm234_vm0 = vcmask (!%p583_p3), 517120   ;;  %v929_v0 = vmov (!%p583_p3), 0.0  }
  0x66   : > { %s223_s30 = scalar_lea.vmem [#allocation8], %s1158_s20  ;;  %233 = sbr.rel (%p583_p3) target bundleno = 109 (0x6d), region = 40  ;;  %235 = vst.msk [vmem:[#allocation2] sm:$0x3] (!%p583_p3), %vm234_vm0, %v929_v0 }
  0x6d PF: > { %v237_v1 = vld [vmem:[%s1149_s12 + $0x8] sm:$0xff]  ;;  %v239_v3 = vld [vmem:[%s1149_s12 + $0x18] sm:$0xff]  ;;  %v275_v4 = vlaneseq  ;;  %v236_v7 = vld [vmem:[%s1149_s12] sm:$0xff]  ;;  %v930_v9 = vmov 1983009808   ;;  %vm433_vm1 = vcmask 517120  }
  0x6e   : > { %v241_v2 = vld [vmem:[%s1149_s12 + $0x28] sm:$0xff]  ;;  %v243_v6 = vld [vmem:[%s1149_s12 + $0x38] sm:$0xff]  ;;  %v240_v8 = vld [vmem:[%s1149_s12 + $0x20] sm:$0xff]  ;;  %v273_v10 = vunpack.c.l.s4 %v930_v9  ;;  %p584_p6 = scmp.ne.s32.totalorder %s906_s15, 1 }
  0x6f   : > { %v591_v5 = vpack.c.bf16 %v241_v2, %v237_v1  ;;  %v607_v11 = vpack.c.bf16 %v243_v6, %v239_v3  ;;  %v593_v12 = vpack.c.bf16 %v240_v8, %v236_v7  ;;  %v238_v13 = vld [vmem:[%s1149_s12 + $0x10] sm:$0xff]  ;;  %v245_v15 = vld [vmem:[%s1149_s12 + $0x48] sm:$0xff]  ;;  %v247_v18 = vld [vmem:[%s1149_s12 + $0x58] sm:$0xff]  ;;  %v276_v21 = vshrl.u32 %v275_v4, 7 }
  0x70   : > { %v242_v14 = vld [vmem:[%s1149_s12 + $0x30] sm:$0xff]  ;;  %v249_v17 = vld [vmem:[%s1149_s12 + $0x68] sm:$0xff]  ;;  %v251_v19 = vld [vmem:[%s1149_s12 + $0x78] sm:$0xff]  ;;  %v274_v20 = vunpack.c.0.s8 %v273_v10 }
  0x71   : > { %592 = vmatprep.subr.bf16.mxu0 %v591_v5  ;;  %v609_v16 = vpack.c.bf16 %v242_v14, %v238_v13  ;;  %608 = vmatprep.subr.bf16.mxu1 %v607_v11  ;;  %v595_v22 = vpack.c.bf16 %v249_v17, %v245_v15  ;;  %v611_v23 = vpack.c.bf16 %v251_v19, %v247_v18  ;;  %v244_v24 = vld [vmem:[%s1149_s12 + $0x40] sm:$0xff]  ;;  %v246_v26 = vld [vmem:[%s1149_s12 + $0x50] sm:$0xff]  ;;  %v253_v28 = vld [vmem:[%s1149_s12 + $0x88] sm:$0xff] }
  0x72   : > { %594 = vmatpush1.bf16.xpose.msra.mxu0 %v593_v12  ;;  %v248_v25 = vld [vmem:[%s1149_s12 + $0x60] sm:$0xff]  ;;  %v250_v27 = vld [vmem:[%s1149_s12 + $0x70] sm:$0xff]  ;;  %v257_v29 = vld [vmem:[%s1149_s12 + $0xa8] sm:$0xff]  ;;  %v277_v32 = vsub.s32 %v274_v20, %v276_v21 }
  0x73   : > { %610 = vmatpush1.bf16.xpose.msra.mxu1 %v609_v16  ;;  %596 = vmatprep.subr.bf16.mxu0 %v595_v22  ;;  %v255_v30 = vld [vmem:[%s1149_s12 + $0x98] sm:$0xff]  ;;  %v597_v33 = vpack.c.bf16 %v248_v25, %v244_v24  ;;  %v613_v34 = vpack.c.bf16 %v250_v27, %v246_v26  ;;  %v599_v35 = vpack.c.bf16 %v257_v29, %v253_v28  ;;  %v252_v40 = vld [vmem:[%s1149_s12 + $0x80] sm:$0xff]  ;;  %v254_v42 = vld [vmem:[%s1149_s12 + $0x90] sm:$0xff] }
  0x74   : > { %612 = vmatprep.subr.bf16.mxu1 %v611_v23  ;;  %v259_v31 = vld [vmem:[%s1149_s12 + $0xb8] sm:$0xff]  ;;  %v256_v41 = vld [vmem:[%s1149_s12 + $0xa0] sm:$0xff]  ;;  %v258_v45 = vld [vmem:[%s1149_s12 + $0xb0] sm:$0xff] }
  0x75   : > { %v615_v36 = vpack.c.bf16 %v259_v31, %v255_v30  ;;  %v268_v37 = vld [vmem:[%s1143_s3] sm:$0xff]  ;;  %v261_v46 = vld [vmem:[%s1149_s12 + $0xc8] sm:$0xff]  ;;  %v601_v51 = vpack.c.bf16 %v256_v41, %v252_v40  ;;  %v617_v52 = vpack.c.bf16 %v258_v45, %v254_v42  ;;  %v260_v55 = vld [vmem:[%s1149_s12 + $0xc0] sm:$0xff] }
  0x76   : > { %v278_v38 = vrot.slane %v268_v37, %v277_v32  ;;  %v271_v39 = vcombine.high %v268_v37, %v268_v37  ;;  %v265_v47 = vld [vmem:[%s1149_s12 + $0xe8] sm:$0xff]  ;;  %v263_v48 = vld [vmem:[%s1149_s12 + $0xd8] sm:$0xff]  ;;  %v264_v56 = vld [vmem:[%s1149_s12 + $0xe0] sm:$0xff] }
  0x77   : > { %v267_v49 = vld [vmem:[%s1149_s12 + $0xf8] sm:$0xff]  ;;  %v603_v53 = vpack.c.bf16 %v265_v47, %v261_v46  ;;  %v262_v57 = vld [vmem:[%s1149_s12 + $0xd0] sm:$0xff]  ;;  %v605_v59 = vpack.c.bf16 %v264_v56, %v260_v55  ;;  %v269_v62 = vld [vmem:[#allocation2] sm:$0x3] }
  0x78   : > { %v286_v43 = vcombine.high %v278_v38, %v278_v38  ;;  %v285_v44 = vrot.slane %v271_v39, %v277_v32  ;;  %v619_v54 = vpack.c.bf16 %v267_v49, %v263_v48  ;;  %v266_v58 = vld [vmem:[%s1149_s12 + $0xf0] sm:$0xff] }
  0x79   : > { %v621_v60 = vpack.c.bf16 %v266_v58, %v262_v57 }
  0x7a   : > { %598 = vmatpush1.bf16.xpose.msra.mxu0 %v597_v33  ;;  %356 = vmatprep.mubr.f32.mxu0 %v286_v43  ;;  %v287_v50 = vcombine.high %v285_v44, %v285_v44 }
  0x7b   : > { %614 = vmatpush1.bf16.xpose.msra.mxu1 %v613_v34  ;;  %600 = vmatprep.subr.bf16.mxu0 %v599_v35 }
  0x7c   : > { %616 = vmatprep.subr.bf16.mxu1 %v615_v36  ;;  %426 = vmatprep.mubr.f32.mxu1 %v287_v50 }
  0x82   : > { %602 = vmatpush1.bf16.xpose.msra.mxu0 %v601_v51 }
  0x83   : > { %618 = vmatpush1.bf16.xpose.msra.mxu1 %v617_v52  ;;  %604 = vmatprep.subr.bf16.mxu0 %v603_v53 }
  0x84   : > { %620 = vmatprep.subr.bf16.mxu1 %v619_v54 }
  0x8a   : > { %606 = vmatpush1.bf16.xpose.msra.mxu0 %v605_v59 }
  0x8b   : > { %622 = vmatpush1.bf16.xpose.msra.mxu1 %v621_v60 }
  0x91   : > { %357 = vmatmul.mubr.f32.vlgmr.msra.gmra.mrb[0].mxu0 %v278_v38 }
  0x92   : > { %427 = vmatmul.mubr.f32.vlgmr.msra.gmra.mrb[0].mxu1 %v285_v44 }
 0x164   : > { %v358_v61 = vpop.f32.mrb[0].mxu0  ;;  %438 = sbr.rel (%p584_p6) target bundleno = 371 (0x173), region = 44 }
 0x165   : > { %v428_v63 = vpop.f32.mrb[0].mxu1  ;;  %v360_v0 = vpop.f32.mrb[1].mxu0 }
 0x166   : > { %v429_v1 = vadd.f32 %v428_v63, %v358_v61  ;;  %v430_v2 = vpop.f32.mrb[1].mxu1 }
 0x168   : > { %v432_v3 = vadd.f32 %v429_v1, %v269_v62 }
 0x16a   : > { %434 = vst.msk [vmem:[#allocation2] sm:$0x3] %vm433_vm1, %v432_v3 }
 0x171   : > { %v439_v4 = vld [vmem:[#allocation2] sm:$0x3] }
 0x172   : > { %440 = vst.msk [vmem:[%s223_s30] sm:$0x3] %vm433_vm1, %v439_v4 }
 0x173 PF: > { %s586_s28 = sshll.u32 %s910_s16, 5  ;;  %s455_s26 = sshll.u32 %s223_s30, 4  ;;  %s456_s26 = int_to_ptr.vmem [resolvable:$true] %s455_s26 }
 0x174   : > { %s1202_s29 = scalar_lea.hbm %s1264_s2, %s586_s28  ;;  %s442_s15 = scalar_lea.sflag [#allocation5], %s221_s0 }
 0x175   : > { %s796_s21 = scalar_lea.vmem %s456_s26, 32  ;;  %p1281_p1 = scmp.ne.s32.totalorder %s1274_s8, 0 }
 0x176   : > { %p797_p9 = scmp.ne.s32.totalorder %s456_s26, %s796_s21  ;;  %s931_s23 = smov [#allocation8]  }
 0x177   : > { %s800_s27 = sshll.u32 %s931_s23, 4  ;;  %s801_s27 = int_to_ptr.vmem [resolvable:$false] %s800_s27 }
 0x178   : > { %p798_p10 = pnand %p797_p9, %p1281_p1  ;;  %s802_s3 = scalar_lea.vmem %s801_s27, 64 }
 0x179   : > { %p803_p12 = scmp.lt.s32.totalorder %s456_s26, %s801_s27  ;;  %p804_p2 = scmp.lt.s32.totalorder %s802_s3, %s796_s21 }
 0x17a   : > { %p799_p11 = pneg %p798_p10 }
 0x17b   : > { %p805_p13 = por %p804_p2, %p803_p12 }
 0x17d   : > { %p806_p0 = pnand %p805_p13, %p799_p11 }
 0x17f   : > { %809 = shalt.err (!%p806_p0)
}
 0x180   : > { %s810_s16 = scalar_lea.hbm %s1202_s29, 32  ;;  %s814_s12 = scalar_lea.hbm %s1264_s2, 64 }
 0x181   : > { %p811_p4 = scmp.ne.s32.totalorder %s1202_s29, %s810_s16  ;;  %p815_p7 = scmp.lt.u32.totalorder %s1202_s29, %s1264_s2 }
 0x182   : > { %p816_p3 = scmp.lt.u32.totalorder %s814_s12, %s810_s16  ;;  %p818_p9 = scmp.lt.u32.totalorder %s810_s16, %s1202_s29 }
 0x183   : > { %p812_p8 = pnand %p811_p4, %p1281_p1 }
 0x184   : > { %p817_p6 = por %p816_p3, %p815_p7 }
 0x185   : > { %p813_p5 = pneg %p812_p8 }
 0x186   : > { %p819_p10 = por %p818_p9, %p817_p6 }
 0x188   : > { %p820_p11 = pnand %p819_p10, %p813_p5 }
 0x18a   : > { %823 = shalt.err (!%p820_p11)
}
 0x18b   : > { %627 = dma.vmem_to_hbm [thread:$0]  (%p1281_p1), %s456_s26, 32, %s1202_s29, %s442_s15  }
 0x18c PF: > { %p641_p12 = scmp.ge.s32.totalorder %s922_s19, 2  ;;  %s467_s30 = sand.u32 1, %s882_s9  }
 0x18d   : > { %p1282_p2 = scmp.ne.s32.totalorder %s1275_s24, 0  ;;  %s468_s28 = scalar_lea.sflag [#allocation5], %s467_s30 }
 0x18f   : > { %p637_p13 = pnand %p641_p12, %p1282_p2 }
 0x191   : > { %877 = dma.done.wait (!%p637_p13), %s468_s28, 32  }
 0x192   : > { %879 = vsyncadd (!%p637_p13), %s468_s28, 4294967264  ;;  %s21_s19 = sadd.s32 1, %s922_s19   ;;  %s1283_s8 = sld [smem:[#allocation12_spill]] }
 0x193   : > { %p18_p0 = scmp.ge.s32.totalorder %s21_s19, 6   ;;  %s1284_s22 = sld [smem:[#allocation13_spill]] }
 0x194   : > { %s1285_s9 = smov %s886_s10  ;;  %s1286_s10 = smov %s890_s11 }
 0x195   : > { %s1287_s11 = smov %s1035_s6  ;;  %s1288_s12 = smov %s898_s13 }
 0x196   : > { %s1289_s13 = smov %s902_s14  ;;  %s1290_s14 = smov %s1038_s7 }
 0x197   : > { %s1291_s15 = smov %s914_s17  ;;  %s1292_s16 = smov %s918_s18 }
 0x198   : > { %s1293_s17 = smov %s1283_s8  ;;  %20 = sbr.rel (!%p18_p0) target bundleno = 13 (0xd), region = 94 }
 0x199   : > { %s1294_s18 = smov %s1284_s22 }
 0x19f   :  { %473 = vsyncpa [#allocation4], 1 }
 0x1a0   :  { %475 = vsyncpa [#allocation4 + $0x1], 1 }
 0x1a1   :  { %476 = vsyncpa [#allocation7], 1 }
 0x1a2   :  { %478 = vsyncpa [#allocation7 + $0x1], 1 }
 0x1a3   :  { %479 = vsyncpa [#allocation5], 1 }
 0x1a4   :  { %481 = vsyncpa [#allocation5 + $0x1], 1 }

</bundles_post_ra>
